<compile_context>
chip_gen: v7x
topology: tpu7x:2x2x1
jax: 0.10.0
libtpu: 0.0.40
codegen_flags: <defaults>
</compile_context>

<pallas_src>
import jax
import jax.numpy as jnp
from jax.experimental import pallas as pl
from jax.experimental.pallas import tpu as pltpu

NUM_ACTIONS = 19          # gfootball default action set size
ACTION_SHOT = 12          # gfootball: action_shot
N_PLAYERS = 11

# Packed feature rows (features on sublanes, batch on lanes) — one sublane tile:
#   row 0: active player x    row 1: active player y
#   row 2: ball x             row 3: ball y
#   row 4: ball_owned_team (f32, exact small int)
#   rows 5..7: zero padding
N_FEAT_ROWS = 8

_TAN_22P5 = 0.41421356237  # tan(22.5 deg): octant decision boundary


def _bot_kernel(feat_ref, action_ref, logit_ref):
    tb = feat_ref.shape[1]                                  # lanes = batch tile
    feat = feat_ref[...]                                    # [8, TB] f32, aligned

    px = feat[0:1, :]                                       # [1, TB]
    py = feat[1:2, :]
    ball_x = feat[2:3, :]
    ball_y = feat[3:4, :]
    owned = feat[4:5, :]

    # --- core heuristic: run toward opponent goal if we own the ball,
    #     otherwise chase the ball ---
    we_own = owned == 0.0
    dx = jnp.where(we_own, 1.0 - px, ball_x - px)           # goal at (1, 0)
    dy = jnp.where(we_own, 0.0 - py, ball_y - py)

    # 8-way direction pick == argmax_i (dx*DIR_X[i] + dy*DIR_Y[i]) over the 8
    # unit directions, computed per-lane via octant comparisons (VPU only,
    # zero cross-sublane XLU reductions).  gfootball action ids:
    #   right=5 bottom_right=6 bottom=7 bottom_left=8
    #   left=1  top_left=2     top=3    top_right=4
    adx = jnp.abs(dx)
    ady = jnp.abs(dy)
    horiz = ady <= _TAN_22P5 * adx                          # axis-x dominates
    vert = adx <= _TAN_22P5 * ady                           # axis-y dominates
    dx_pos = dx >= 0.0
    dy_pos = dy >= 0.0
    horiz_a = jnp.where(dx_pos, 5, 1)
    vert_a = jnp.where(dy_pos, 7, 3)
    diag_a = jnp.where(dx_pos,
                       jnp.where(dy_pos, 6, 4),
                       jnp.where(dy_pos, 8, 2))
    dir_action = jnp.where(horiz, horiz_a, jnp.where(vert, vert_a, diag_a))

    near_goal = (px > 0.7) & (jnp.abs(py) < 0.3)
    shot = we_own & near_goal
    action = jnp.where(shot, ACTION_SHOT, dir_action).astype(jnp.int32)  # [1, TB]

    # int action straight from the kernel (no wrapper-side argmax HBM pass)
    action_ref[...] = action
    # lane-dense one-hot logits
    aidx = jax.lax.broadcasted_iota(jnp.int32, (NUM_ACTIONS, tb), 0)
    logit_ref[...] = (aidx == action).astype(jnp.float32)   # [19, TB]


def _round_up(x, m):
    return (x + m - 1) // m * m


def _choose_grid(B, tile_b):
    """Pick (tile, b_pad, n_steps): batch padded to 128, overshoot < 128/step,
    >=2 grid steps when possible so v7x megacore ("parallel") has work on
    both TensorCores."""
    b128 = _round_up(max(B, 1), 128)
    n = pl.cdiv(b128, max(128, tile_b))
    if b128 >= 256:
        n = max(n, 2)
    tile = _round_up(pl.cdiv(b128, n), 128)
    b_pad = n * tile
    return tile, b_pad, n


def football_kaggle_5th_place_forward(data, *, tile_b=32768):
    """JAX/Pallas analogue of FootballKaggle5thPlaceModel.forward.

    tile_b: max batch lanes per grid block (multiple of 128).  32768 lanes is
    ~7.3 MiB of double-buffered blocks — large enough to amortize the
    ~0.35 us/step pipeline overhead, small enough for every generation's VMEM
    (limit set explicitly below for v5e's 16 MiB default scoped VMEM).
    """
    obs = data['raw_obs']
    left_team = jnp.asarray(obs['left_team'], jnp.float32)   # [B, 11, 2]
    ball = jnp.asarray(obs['ball'], jnp.float32)             # [B, 3]
    active = jnp.asarray(obs['active'], jnp.int32)           # [B]
    owned = jnp.asarray(obs['ball_owned_team'], jnp.int32)   # [B]
    B = left_team.shape[0]

    tile, b_pad, _ = _choose_grid(B, tile_b)

    # ---- glue: gather active player in the wrapper and pack ONE [8, B_pad]
    #      f32 slab directly in kernel layout (no transpose of a [B, F] array) ----
    px = jnp.take_along_axis(left_team[:, :, 0], active[:, None], axis=1)[:, 0]  # [B]
    py = jnp.take_along_axis(left_team[:, :, 1], active[:, None], axis=1)[:, 0]  # [B]
    zeros = jnp.zeros((B,), jnp.float32)
    feat_t = jnp.stack(
        [px, py, ball[:, 0], ball[:, 1], owned.astype(jnp.float32),
         zeros, zeros, zeros],
        axis=0,
    )                                                        # [8, B]
    feat_t = jnp.pad(feat_t, ((0, 0), (0, b_pad - B)))       # [8, B_pad]

    # the torch module's only real parameter is a dummy zeros(1,1); kept for fidelity
    _dummy_param = jnp.zeros((1, 1), jnp.float32)            # unused

    # explicit VMEM limit: double-buffered in+out blocks + headroom
    vmem_need = 2 * 4 * (N_FEAT_ROWS + 1 + NUM_ACTIONS) * tile
    vmem_limit = int(min(64 * 1024 * 1024,
                         max(32 * 1024 * 1024, vmem_need + (4 << 20))))

    action_row, logit_t = pl.pallas_call(
        _bot_kernel,
        out_shape=(
            jax.ShapeDtypeStruct((1, b_pad), jnp.int32),
            jax.ShapeDtypeStruct((NUM_ACTIONS, b_pad), jnp.float32),
        ),
        grid_spec=pltpu.PrefetchScalarGridSpec(
            num_scalar_prefetch=0,
            grid=(b_pad // tile,),
            in_specs=[pl.BlockSpec((N_FEAT_ROWS, tile), lambda i: (0, i))],
            out_specs=[
                pl.BlockSpec((1, tile), lambda i: (0, i)),
                pl.BlockSpec((NUM_ACTIONS, tile), lambda i: (0, i)),
            ],
        ),
        compiler_params=pltpu.CompilerParams(
            dimension_semantics=("parallel",),
            vmem_limit_bytes=vmem_limit,
        ),
    )(feat_t)

    # padded lanes are sliced away; torch returns LongTensor — int32 under JAX
    action = action_row[0, :B]                               # [B] int32
    logit = logit_t[:, :B].T                                 # [B, 19] f32 (exact one-hot)
    return {'action': action, 'logit': logit}


if __name__ == "__main__":
    B, P = 8, N_PLAYERS
    key = jax.random.PRNGKey(0)
    k1, k2, k3, k4, k5, k6 = jax.random.split(key, 6)

    raw_obs = {
        'left_team': jax.random.uniform(k1, (B, P, 2), jnp.float32,
                                        minval=-1.0, maxval=1.0),
        'right_team': jax.random.uniform(k2, (B, P, 2), jnp.float32,
                                         minval=-1.0, maxval=1.0),
        'ball': jax.random.uniform(k3, (B, 3), jnp.float32,
                                   minval=-1.0, maxval=1.0),
        'active': jax.random.randint(k4, (B,), 0, P, jnp.int32),
        'ball_owned_team': jax.random.randint(k5, (B,), -1, 2, jnp.int32),
        # present in the real observation dict but unused by the in-kernel
        # heuristic (see TODO(synk) above):
        'sticky_actions': jnp.zeros((B, 10), jnp.int32),
        'score': jnp.zeros((B, 2), jnp.int32),
        'steps_left': jnp.full((B,), 3000, jnp.int32),
        'game_mode': jnp.zeros((B,), jnp.int32),
        'designated': jax.random.randint(k6, (B,), 0, P, jnp.int32),
        'ball_owned_player': jnp.zeros((B,), jnp.int32),
    }

    out = football_kaggle_5th_place_forward({'raw_obs': raw_obs})
    jax.block_until_ready(out)

    assert out['action'].shape == (B,)
    assert out['logit'].shape == (B, NUM_ACTIONS)
    assert out['logit'].dtype == jnp.float32
    # logits are exact one-hot of the chosen actions
    assert bool(jnp.all(jnp.sum(out['logit'], axis=-1) == 1.0))
    assert bool(jnp.all(jnp.argmax(out['logit'], axis=-1) == out['action']))
    assert bool(jnp.all((out['action'] >= 0) & (out['action'] < NUM_ACTIONS)))

    print("KERNEL_OK")
</pallas_src>

<mosaic_0001>
module attributes {stable_mosaic.version = 11 : i64} {
  func.func @_bot_kernel(%arg0: i32, %arg1: memref<8x128xf32, #tpu.memory_space<vmem>>, %arg2: memref<1x128xi32, #tpu.memory_space<vmem>>, %arg3: memref<19x128xf32, #tpu.memory_space<vmem>>) attributes {dimension_semantics = [#tpu.dimension_semantics<parallel>], iteration_bounds = array<i64: 1>, scalar_prefetch = 0 : i64, scratch_operands = 0 : i64, tpu.core_type = #tpu.core_type<tc>, window_params = [{transform_indices = @transform_0, window_bounds = array<i64: 8, 128>}, {transform_indices = @transform_1, window_bounds = array<i64: 1, 128>}, {transform_indices = @transform_2, window_bounds = array<i64: 19, 128>}]} {
    %c0 = arith.constant 0 : index
    %c0_0 = arith.constant 0 : index
    %0 = vector.load %arg1[%c0, %c0_0] : memref<8x128xf32, #tpu.memory_space<vmem>>, vector<8x128xf32>
    %1 = vector.extract_strided_slice %0 {offsets = [0, 0], sizes = [1, 128], strides = [1, 1]} : vector<8x128xf32> to vector<1x128xf32>
    %2 = vector.extract_strided_slice %0 {offsets = [1, 0], sizes = [1, 128], strides = [1, 1]} : vector<8x128xf32> to vector<1x128xf32>
    %3 = vector.extract_strided_slice %0 {offsets = [2, 0], sizes = [1, 128], strides = [1, 1]} : vector<8x128xf32> to vector<1x128xf32>
    %4 = vector.extract_strided_slice %0 {offsets = [3, 0], sizes = [1, 128], strides = [1, 1]} : vector<8x128xf32> to vector<1x128xf32>
    %5 = vector.extract_strided_slice %0 {offsets = [4, 0], sizes = [1, 128], strides = [1, 1]} : vector<8x128xf32> to vector<1x128xf32>
    %cst = arith.constant 0.000000e+00 : f32
    %6 = vector.broadcast %cst : f32 to vector<1x128xf32>
    %7 = arith.cmpf oeq, %5, %6 : vector<1x128xf32>
    %cst_1 = arith.constant 1.000000e+00 : f32
    %8 = vector.broadcast %cst_1 : f32 to vector<1x128xf32>
    %9 = arith.subf %8, %1 : vector<1x128xf32>
    %10 = arith.subf %3, %1 : vector<1x128xf32>
    %11 = arith.select %7, %9, %10 : vector<1x128xi1>, vector<1x128xf32>
    %cst_2 = arith.constant 0.000000e+00 : f32
    %12 = vector.broadcast %cst_2 : f32 to vector<1x128xf32>
    %13 = arith.subf %12, %2 : vector<1x128xf32>
    %14 = arith.subf %4, %2 : vector<1x128xf32>
    %15 = arith.select %7, %13, %14 : vector<1x128xi1>, vector<1x128xf32>
    %16 = math.absf %11 : vector<1x128xf32>
    %17 = math.absf %15 : vector<1x128xf32>
    %cst_3 = arith.constant 0.414213568 : f32
    %18 = vector.broadcast %cst_3 : f32 to vector<1x128xf32>
    %19 = arith.mulf %18, %16 : vector<1x128xf32>
    %20 = arith.cmpf ole, %17, %19 : vector<1x128xf32>
    %cst_4 = arith.constant 0.414213568 : f32
    %21 = vector.broadcast %cst_4 : f32 to vector<1x128xf32>
    %22 = arith.mulf %21, %17 : vector<1x128xf32>
    %23 = arith.cmpf ole, %16, %22 : vector<1x128xf32>
    %cst_5 = arith.constant 0.000000e+00 : f32
    %24 = vector.broadcast %cst_5 : f32 to vector<1x128xf32>
    %25 = arith.cmpf oge, %11, %24 : vector<1x128xf32>
    %cst_6 = arith.constant 0.000000e+00 : f32
    %26 = vector.broadcast %cst_6 : f32 to vector<1x128xf32>
    %27 = arith.cmpf oge, %15, %26 : vector<1x128xf32>
    %c5_i32 = arith.constant 5 : i32
    %c1_i32 = arith.constant 1 : i32
    %28 = vector.broadcast %c5_i32 : i32 to vector<1x128xi32>
    %29 = vector.broadcast %c1_i32 : i32 to vector<1x128xi32>
    %30 = arith.select %25, %28, %29 : vector<1x128xi1>, vector<1x128xi32>
    %c7_i32 = arith.constant 7 : i32
    %c3_i32 = arith.constant 3 : i32
    %31 = vector.broadcast %c7_i32 : i32 to vector<1x128xi32>
    %32 = vector.broadcast %c3_i32 : i32 to vector<1x128xi32>
    %33 = arith.select %27, %31, %32 : vector<1x128xi1>, vector<1x128xi32>
    %c6_i32 = arith.constant 6 : i32
    %c4_i32 = arith.constant 4 : i32
    %34 = vector.broadcast %c6_i32 : i32 to vector<1x128xi32>
    %35 = vector.broadcast %c4_i32 : i32 to vector<1x128xi32>
    %36 = arith.select %27, %34, %35 : vector<1x128xi1>, vector<1x128xi32>
    %c8_i32 = arith.constant 8 : i32
    %c2_i32 = arith.constant 2 : i32
    %37 = vector.broadcast %c8_i32 : i32 to vector<1x128xi32>
    %38 = vector.broadcast %c2_i32 : i32 to vector<1x128xi32>
    %39 = arith.select %27, %37, %38 : vector<1x128xi1>, vector<1x128xi32>
    %40 = arith.select %25, %36, %39 : vector<1x128xi1>, vector<1x128xi32>
    %41 = arith.select %23, %33, %40 : vector<1x128xi1>, vector<1x128xi32>
    %42 = arith.select %20, %30, %41 : vector<1x128xi1>, vector<1x128xi32>
    %cst_7 = arith.constant 0.699999988 : f32
    %43 = vector.broadcast %cst_7 : f32 to vector<1x128xf32>
    %44 = arith.cmpf ogt, %1, %43 : vector<1x128xf32>
    %45 = math.absf %2 : vector<1x128xf32>
    %cst_8 = arith.constant 3.000000e-01 : f32
    %46 = vector.broadcast %cst_8 : f32 to vector<1x128xf32>
    %47 = arith.cmpf olt, %45, %46 : vector<1x128xf32>
    %48 = arith.andi %44, %47 : vector<1x128xi1>
    %49 = arith.andi %7, %48 : vector<1x128xi1>
    %c12_i32 = arith.constant 12 : i32
    %50 = vector.broadcast %c12_i32 : i32 to vector<1x128xi32>
    %51 = arith.select %49, %50, %42 : vector<1x128xi1>, vector<1x128xi32>
    %c0_9 = arith.constant 0 : index
    %c0_10 = arith.constant 0 : index
    %52 = vector.load %arg2[%c0_9, %c0_10] : memref<1x128xi32, #tpu.memory_space<vmem>>, vector<1x128xi32>
    tpu.vector_store %arg2[%c0_9, %c0_10], %51 {strides = array<i32>} : memref<1x128xi32, #tpu.memory_space<vmem>>, vector<1x128xi32>,
    %53 = tpu.iota {dimensions = array<i32: 0>} : vector<19x128xi32>
    %54 = vector.broadcast %51 : vector<1x128xi32> to vector<19x128xi32>
    %55 = arith.cmpi eq, %53, %54 : vector<19x128xi32>
    %56 = arith.extui %55 : vector<19x128xi1> to vector<19x128xi32>
    %57 = arith.sitofp %56 : vector<19x128xi32> to vector<19x128xf32>
    %c0_11 = arith.constant 0 : index
    %c0_12 = arith.constant 0 : index
    %58 = vector.load %arg3[%c0_11, %c0_12] : memref<19x128xf32, #tpu.memory_space<vmem>>, vector<19x128xf32>
    tpu.vector_store %arg3[%c0_11, %c0_12], %57 {strides = array<i32>} : memref<19x128xf32, #tpu.memory_space<vmem>>, vector<19x128xf32>,
    return
  }
  func.func @transform_0(%arg0: i32) -> (i32, i32) {
    %c0_i32 = arith.constant 0 : i32
    %c0_i32_0 = arith.constant 0 : i32
    return %c0_i32, %arg0 : i32, i32
  }
  func.func @transform_1(%arg0: i32) -> (i32, i32) {
    %c0_i32 = arith.constant 0 : i32
    %c0_i32_0 = arith.constant 0 : i32
    return %c0_i32, %arg0 : i32, i32
  }
  func.func @transform_2(%arg0: i32) -> (i32, i32) {
    %c0_i32 = arith.constant 0 : i32
    %c0_i32_0 = arith.constant 0 : i32
    return %c0_i32, %arg0 : i32, i32
  }
}

</mosaic_0001>

<bundles_post_ra>
// kernel: tpu_custom_call.1
= control target key start
LH: loop header
LB: loop body
LE: loop exit
PB: predicated region body
PF: predicated region fallthrough
CT: control target
= control target key end

     0   :  { %8 = vsyncpa [#allocation3], 0  ;;  %s283_s0 = inlined_call_operand.hbm [shape: f32[8,128], index: 0, kind: input, shape index: {}]   ;;  %s284_s1 = inlined_call_operand.hbm [shape: s32[1,128], index: 1, kind: output, shape index: {0}]   ;;  %s285_s2 = inlined_call_operand.hbm [shape: f32[19,128], index: 2, kind: output, shape index: {1}]  }
   0x1   :  { %9 = vsyncpa [#allocation4], 0 }
   0x2   :  { %10 = vsyncpa [#allocation7], 0  ;;  %s210_s9 = smov [#allocation2]   ;;  %s138_s13 = scalar_lea.hbm %s283_s0, 128 }
   0x3   :  { %s17_s10 = sshll.u32 %s210_s9, 4  ;;  %p139_p0 = scmp.ne.s32.totalorder %s283_s0, %s138_s13  ;;  %s18_s10 = int_to_ptr.vmem [resolvable:$true] %s17_s10 }
   0x4   :  { %p142_p1 = scmp.lt.u32.totalorder %s138_s13, %s283_s0 }
   0x6   :  { %p144_p2 = pnand %p142_p1, %p139_p0 }
   0x8   :  { %147 = shalt.err (!%p144_p2)
}
   0x9   :  { %s148_s18 = scalar_lea.vmem %s18_s10, 128  ;;  %p153_p4 = scmp.lt.s32.totalorder %s18_s10, %s18_s10 }
   0xa   :  { %p149_p3 = scmp.ne.s32.totalorder %s18_s10, %s148_s18  ;;  %p154_p5 = scmp.lt.s32.totalorder %s148_s18, %s148_s18 }
   0xc   :  { %p155_p6 = por %p154_p5, %p153_p4 }
   0xe   :  { %p156_p7 = pnand %p155_p6, %p149_p3 }
  0x10   :  { %159 = shalt.err (!%p156_p7)
}
  0x11   :  { %20 = dma.hbm_to_vmem [thread:$0]  %s283_s0, 128, %s18_s10, [#allocation3]  }
  0x12   :  { %204 = dma.done.wait [#allocation3], 128  }
  0x13   :  { %205 = vsyncadd [#allocation3], 4294967168  ;;  %v24_v0 = vld [vmem:[#allocation2] sm:$0xff]  ;;  %v211_v10 = vmov 0   ;;  %v73_v12 = vlaneseq  ;;  %v212_v18 = vmov 3   ;;  %v213_v20 = vmov 4  }
  0x14   :  { %v26_v1 = vsub.f32 1.0, %v24_v0  ;;  %v28_v2 = vrot.slane %v24_v0, 6  ;;  %v38_v3 = vsub.f32 0.0, %v24_v0  ;;  %v61_v4 = vand.u32 2147483647, %v24_v0  ;;  %s216_s0 = smov [#allocation5]  }
  0x15   :  { %vm25_vm0 = vcmp.eq.f32.partialorder %v24_v0, 0.0  ;;  %vm60_vm2 = vcmp.gt.f32.partialorder %v24_v0, 0.7  ;;  %v214_v22 = vmov 2   ;;  %v74_v24 = vshrl.u32 %v73_v12, 7  ;;  %s99_s21 = sshll.u32 %s216_s0, 4  ;;  %s100_s21 = int_to_ptr.vmem [resolvable:$true] %s99_s21 }
  0x16   :  { %v30_v5 = vsub.f32 %v24_v0, %v28_v2  ;;  %v32_v6 = vrot.slane %v26_v1, 4  ;;  %v40_v7 = vrot.slane %v38_v3, 5  ;;  %vm62_vm1 = vcmp.lt.f32.partialorder %v61_v4, 0.3  ;;  %s217_s22 = smov [#allocation6]   ;;  %s160_s24 = scalar_lea.vmem %s100_s21, 16 }
  0x17   :  { %v63_v11 = vsel %vm62_vm1, 1, %v211_v10  ;;  %v215_v28 = vmov 1   ;;  %v79_v34 = vsub.s32 4, %v74_v24  ;;  %s108_s23 = sshll.u32 %s217_s22, 4  ;;  %v75_v35 = vadd.s32 8, %v74_v24  ;;  %p161_p8 = scmp.ne.s32.totalorder %s100_s21, %s160_s24  ;;  %s252_s23 = int_to_ptr.vmem [resolvable:$true] %s108_s23 }
  0x18   :  { %v35_v8 = vrot.slane %v30_v5, 6  ;;  %v42_v9 = vrot.slane %v30_v5, 7  ;;  %v64_v13 = vrot.slane %v63_v11, 1  ;;  %v76_v36 = vadd.s32 16, %v74_v24  ;;  %s164_s25 = scalar_lea.vmem %s100_s21, 32  ;;  %p165_p9 = scmp.lt.s32.totalorder %s100_s21, %s100_s21 }
  0x19   :  { %p166_p10 = scmp.lt.s32.totalorder %s164_s25, %s160_s24 }
  0x1a   :  { %v37_v14 = vsel %vm25_vm0, %v32_v6, %v35_v8  ;;  %v44_v15 = vsel %vm25_vm0, %v40_v7, %v42_v9  ;;  %vm65_vm5 = vcmp.ne.s32.totalorder %v64_v13, 0 }
  0x1b   :  { %v45_v16 = vand.u32 2147483647, %v37_v14  ;;  %v46_v17 = vand.u32 2147483647, %v44_v15  ;;  %vm51_vm3 = vcmp.ge.f32.partialorder %v37_v14, 0.0  ;;  %vm52_vm4 = vcmp.ge.f32.partialorder %v44_v15, 0.0  ;;  %vm66_vm6 = vmand %vm60_vm2, %vm65_vm5  ;;  %p167_p11 = por %p166_p10, %p165_p9 }
  0x1c   :  { %v54_v19 = vsel %vm52_vm4, 7, %v212_v18  ;;  %v55_v21 = vsel %vm52_vm4, 6, %v213_v20  ;;  %v56_v23 = vsel %vm52_vm4, 8, %v214_v22  ;;  %v53_v29 = vsel %vm51_vm3, 5, %v215_v28 }
  0x1d   :  { %v47_v25 = vmul.f32 0.41421357, %v45_v16  ;;  %v49_v26 = vmul.f32 0.41421357, %v46_v17  ;;  %v57_v27 = vsel %vm51_vm3, %v55_v21, %v56_v23  ;;  %v67_v30 = vsel %vm66_vm6, 1, %v211_v10  ;;  %p168_p12 = pnand %p167_p11, %p161_p8 }
  0x1e   :  { %v68_v32 = vrot.slane %v67_v30, 4 }
  0x1f   :  { %vm48_vm7 = vcmp.le.f32.partialorder %v46_v17, %v47_v25  ;;  %vm50_vm8 = vcmp.le.f32.partialorder %v45_v16, %v49_v26 }
  0x20   :  { %v58_v31 = vsel %vm50_vm8, %v54_v19, %v57_v27  ;;  %vm69_vm9 = vcmp.ne.s32.totalorder %v68_v32, 0 }
  0x21   :  { %v59_v33 = vsel %vm48_vm7, %v53_v29, %v58_v31  ;;  %vm70_vm10 = vmand %vm25_vm0, %vm69_vm9 }
  0x22   :  { %v71_v37 = vsel %vm70_vm10, 12, %v59_v33 }
  0x23   :  { %72 = vst [vmem:[#allocation5 - $0x4] sm:$0x10] %v71_v37  ;;  %v80_v38 = vrot.slane %v71_v37, %v79_v34 }
  0x24   :  { %171 = shalt.err (!%p168_p12)
}
  0x25   :  { %s172_s28 = scalar_lea.hbm %s284_s1, 16 }
  0x26   :  { %p173_p13 = scmp.ne.s32.totalorder %s284_s1, %s172_s28  ;;  %p176_p0 = scmp.lt.u32.totalorder %s172_s28, %s284_s1 }
  0x28   :  { %p178_p1 = pnand %p176_p0, %p173_p13 }
  0x2a   :  { %181 = shalt.err (!%p178_p1)
}
  0x2b   :  { %102 = dma.vmem_to_hbm [thread:$0]  %s100_s21, 16, %s284_s1, [#allocation4]   ;;  %vm81_vm11 = vcmp.eq.s32.totalorder %v74_v24, %v80_v38  ;;  %vm82_vm12 = vcmp.eq.s32.totalorder %v75_v35, %v80_v38  ;;  %vm83_vm13 = vcmp.eq.s32.totalorder %v76_v36, %v80_v38  ;;  %v218_v39 = vmov 0.0  }
  0x2c   :  { %v124_v40 = vsel %vm81_vm11, 1.0, %v218_v39  ;;  %v125_v41 = vsel %vm82_vm12, 1.0, %v218_v39  ;;  %v126_v42 = vsel %vm83_vm13, 1.0, %v218_v39  ;;  %s182_s7 = scalar_lea.vmem %s252_s23, 384  ;;  %p187_p3 = scmp.lt.s32.totalorder %s252_s23, %s252_s23 }
  0x2d   :  { %90 = vst [vmem:[#allocation6] sm:$0xff] %v124_v40  ;;  %91 = vst [vmem:[#allocation6 + $0x8] sm:$0xff] %v125_v41  ;;  %p183_p2 = scmp.ne.s32.totalorder %s252_s23, %s182_s7  ;;  %p188_p4 = scmp.lt.s32.totalorder %s182_s7, %s182_s7 }
  0x2e   :  { %92 = vst [vmem:[#allocation6 + $0x10] sm:$0x7] %v126_v42 }
  0x2f   :  { %p189_p5 = por %p188_p4, %p187_p3 }
  0x31   :  { %p190_p6 = pnand %p189_p5, %p183_p2 }
  0x33   :  { %193 = shalt.err (!%p190_p6)
}
  0x34   :  { %s194_s9 = scalar_lea.hbm %s285_s2, 384 }
  0x35   :  { %p195_p7 = scmp.ne.s32.totalorder %s285_s2, %s194_s9  ;;  %p198_p8 = scmp.lt.u32.totalorder %s194_s9, %s285_s2 }
  0x37   :  { %p200_p9 = pnand %p198_p8, %p195_p7 }
  0x39   :  { %203 = shalt.err (!%p200_p9)
}
  0x3a   :  { %s219_s14 = smov 128   ;;  %s220_s15 = smov 8  }
  0x3b   :  { %114 = dma.vmem_to_hbm [thread:$0]  %s252_s23, 384, %s285_s2, [#allocation7], %s219_s14, %s219_s14, %s220_s15  }
  0x3c   :  { %206 = dma.done.wait [#allocation4], 16  }
  0x3d   :  { %207 = vsyncadd [#allocation4], 4294967280 }
  0x3e   :  { %208 = dma.done.wait [#allocation7], 384  }
  0x3f   :  { %209 = vsyncadd [#allocation7], 4294966912 }
  0x40   :  { %121 = vsyncpa [#allocation3], 1 }
  0x41   :  { %122 = vsyncpa [#allocation4], 1 }
  0x42   :  { %123 = vsyncpa [#allocation7], 1 }

</bundles_post_ra>
